<compile_context>
chip_gen: v6e
topology: v6e:2x2x1
jax: 0.10.0
libtpu: 0.0.40
codegen_flags: <defaults>
</compile_context>

<pallas_src>
import functools

import jax
import jax.numpy as jnp
from jax.experimental import pallas as pl
from jax.experimental.pallas import tpu as pltpu


def _channel_attention_kernel(x_ref, w1t_ref, w2t_ref, o_ref, sum_acc, max_acc, *,
                              hw_true, hw_tile, acc_w, bt, c_grp, nk, needs_mask):
    # x_ref   : (bt, C, hw_tile)  input tile (native dtype)
    # w1t_ref : (C, Ch)           first 1x1 conv weight, pre-transposed
    # w2t_ref : (Ch, C)           second 1x1 conv weight, pre-transposed
    # o_ref   : (bt, 1, C)        tanh channel gate (written on last HW tile only)
    # sum_acc : (bt, C, acc_w)    f32 running sum   (acc_w == 128 when hw_tile % 128 == 0)
    # max_acc : (bt, C, acc_w)    f32 running max
    k = pl.program_id(1)
    C = x_ref.shape[1]
    n_chunks = hw_tile // acc_w

    @pl.when(k == 0)
    def _init():
        sum_acc[...] = jnp.zeros_like(sum_acc)
        max_acc[...] = jnp.full_like(max_acc, -jnp.inf)

    def _accumulate(base):
        # base: static element offset of this tile along HW (None => no masking needed).
        masked = base is not None
        if masked:
            lane = jax.lax.broadcasted_iota(jnp.int32, (1, 1, acc_w), 2)
        for c0 in range(0, C, c_grp):
            rows = min(c_grp, C - c0)
            psum = None
            pmax = None
            for j in range(n_chunks):
                chunk = x_ref[:, c0:c0 + rows, j * acc_w:(j + 1) * acc_w]
                chunk = chunk.astype(jnp.float32)
                if masked:
                    valid = (base + j * acc_w + lane) < hw_true   # static per chunk
                    csum = jnp.where(valid, chunk, 0.0)
                    cmax = jnp.where(valid, chunk, -jnp.inf)
                else:
                    csum = chunk
                    cmax = chunk
                psum = csum if psum is None else psum + csum
                pmax = cmax if pmax is None else jnp.maximum(pmax, cmax)
            # Single scratch read-modify-write per C group per grid step.
            sum_acc[:, c0:c0 + rows, :] = sum_acc[:, c0:c0 + rows, :] + psum
            max_acc[:, c0:c0 + rows, :] = jnp.maximum(max_acc[:, c0:c0 + rows, :], pmax)

    if needs_mask:
        # Hot path: all full tiles run without the iota/compare/select overhead.
        @pl.when(k < nk - 1)
        def _hot():
            _accumulate(None)

        @pl.when(k == nk - 1)
        def _last():
            _accumulate((nk - 1) * hw_tile)
    else:
        _accumulate(None)

    @pl.when(k == nk - 1)
    def _finalize():
        # One cross-lane reduce per (b, c) row, only once per batch block.
        avg = jnp.sum(sum_acc[...], axis=-1) * jnp.float32(1.0 / hw_true)   # (bt, C)
        mx = jnp.max(max_acc[...], axis=-1)                                 # (bt, C)
        # Shared-weight FC applied once to the stacked [avg; max] matrix.
        v = jnp.concatenate([avg, mx], axis=0)                              # (2*bt, C)
        h = jnp.maximum(
            jnp.dot(v, w1t_ref[...], preferred_element_type=jnp.float32), 0.0)
        y = jnp.dot(h, w2t_ref[...], preferred_element_type=jnp.float32)    # (2*bt, C)
        gate = jnp.tanh(y[:bt, :] + y[bt:, :])                              # (bt, C)
        o_ref[...] = gate[:, None, :].astype(o_ref.dtype)


def channel_attention(x, w1, w2, *, max_hw_tile=None):
    """x: (B, C, H, W); w1: (C//8, C); w2: (C, C//8). Returns (B, C, 1, 1) float32."""
    B, C, H, W = x.shape
    HW = H * W
    Ch = w1.shape[0]

    # Stream x in its native dtype (bf16 upstream halves HBM traffic); accumulation
    # happens in f32 scratch inside the kernel.
    xf = x.reshape(B, C, HW)
    w1t = jnp.asarray(w1, jnp.float32).T  # (C, Ch)  one-time wrapper-side transpose
    w2t = jnp.asarray(w2, jnp.float32).T  # (Ch, C)

    LANE = 128
    x_bytes = xf.dtype.itemsize

    # ---- spatial tile: largest multiple of 128 keeping one (1, C, hw_tile) x block
    # around <= 6 MiB (Pallas double-buffers it), capped at 4096 lanes.
    x_blk_budget = 6 * 1024 * 1024
    max_hwt = max(LANE, (x_blk_budget // (x_bytes * max(C, 1))) // LANE * LANE)
    hwt_cap = min(4096, max_hwt)
    if max_hw_tile is not None:                      # test hook: force small tiles
        hwt_cap = min(hwt_cap, max(LANE, max_hw_tile // LANE * LANE))
    hw_tile = HW if HW <= hwt_cap else hwt_cap
    nk = pl.cdiv(HW, hw_tile)
    needs_mask = (HW % hw_tile) != 0
    # Shrunk accumulator width (128 whenever the tile is lane-chunkable).
    acc_w = LANE if hw_tile % LANE == 0 else hw_tile

    # ---- batch tile: amortize the ~0.35 us/step overhead, make the x DMA contiguous
    # and fill more MXU rows in the finalize matmul, while keeping double-buffered x
    # + both f32 accumulators within ~40 MiB (v7x: 64 MiB VMEM/TC; v5e/v6e: 128 MiB).
    vmem_budget = 40 * 1024 * 1024
    per_bt = 2 * C * hw_tile * x_bytes + 2 * C * acc_w * 4
    bt_cap = int(max(1, min(32, vmem_budget // max(per_bt, 1))))
    bt = 1
    for d in range(1, B + 1):
        # Divisor of B (no truncation), within VMEM budget, and keep a batch grid of
        # >= 2 whenever possible so megacore sharding engages both TensorCores.
        if B % d == 0 and d <= bt_cap and (B // d >= 2 or B == 1):
            bt = d

    # Bound vreg pressure in the in-kernel fold: process C in groups of rows.
    c_grp = min(C, max(8, (128 // bt) // 8 * 8))

    kernel = functools.partial(
        _channel_attention_kernel,
        hw_true=HW, hw_tile=hw_tile, acc_w=acc_w, bt=bt, c_grp=c_grp,
        nk=nk, needs_mask=needs_mask)

    out = pl.pallas_call(
        kernel,
        out_shape=jax.ShapeDtypeStruct((B, 1, C), jnp.float32),
        grid_spec=pltpu.PrefetchScalarGridSpec(
            num_scalar_prefetch=0,
            grid=(B // bt, nk),
            in_specs=[
                pl.BlockSpec((bt, C, hw_tile), lambda b, k: (b, 0, k)),
                pl.BlockSpec((C, Ch), lambda b, k: (0, 0)),
                pl.BlockSpec((Ch, C), lambda b, k: (0, 0)),
            ],
            out_specs=pl.BlockSpec((bt, 1, C), lambda b, k: (b, 0, 0)),
            scratch_shapes=[
                pltpu.VMEM((bt, C, acc_w), jnp.float32),  # running sum
                pltpu.VMEM((bt, C, acc_w), jnp.float32),  # running max
            ],
        ),
        compiler_params=pltpu.CompilerParams(
            dimension_semantics=("parallel", "arbitrary"),
            vmem_limit_bytes=48 * 1024 * 1024,
        ),
    )(xf, w1t, w2t)

    return out.reshape(B, C, 1, 1)


def channel_attention_ref(x, w1, w2):
    """Plain-JAX reference mirroring the PyTorch forward."""
    avg = jnp.mean(x.astype(jnp.float32), axis=(2, 3))  # (B, C)
    mx = jnp.max(x.astype(jnp.float32), axis=(2, 3))    # (B, C)

    def fc(v):
        h = jnp.maximum(v @ w1.T, 0.0)
        return h @ w2.T

    return jnp.tanh(fc(avg) + fc(mx)).reshape(x.shape[0], x.shape[1], 1, 1)


if __name__ == "__main__":
    # Small, deterministic example: B=2, C=16 (so hidden = C // 8 = 2), H=W=16.
    B, C, H, W = 2, 16, 16, 16
    Ch = C // 8

    key = jax.random.PRNGKey(0)
    kx, k1, k2, kx2 = jax.random.split(key, 4)

    x = jax.random.normal(kx, (B, C, H, W), dtype=jnp.float32)
    # Deterministic synthetic weights (Conv2d k=1x1, no bias => (out, in) matrices).
    w1 = 0.1 * jax.random.normal(k1, (Ch, C), dtype=jnp.float32)
    w2 = 0.1 * jax.random.normal(k2, (C, Ch), dtype=jnp.float32)

    # --- main check: single spatial tile path.
    out = channel_attention(x, w1, w2)
    out = jax.block_until_ready(out)
    ref = channel_attention_ref(x, w1, w2)
    assert out.shape == (B, C, 1, 1)
    assert jnp.allclose(out, ref, atol=1e-5, rtol=1e-5), "mismatch vs reference"

    # --- second check: force multi-tile streaming with a partial (masked) last tile.
    x2 = jax.random.normal(kx2, (B, C, 12, 12), dtype=jnp.float32)   # HW=144 > 128
    out2 = channel_attention(x2, w1, w2, max_hw_tile=128)
    out2 = jax.block_until_ready(out2)
    ref2 = channel_attention_ref(x2, w1, w2)
    assert jnp.allclose(out2, ref2, atol=1e-5, rtol=1e-5), "mismatch (masked path)"

    print("KERNEL_OK")
</pallas_src>

<mosaic_0001>
module attributes {stable_mosaic.version = 11 : i64} {
  func.func @_channel_attention_kernel(%arg0: i32, %arg1: i32, %arg2: memref<1x16x256xf32, #tpu.memory_space<vmem>>, %arg3: memref<16x2xf32, #tpu.memory_space<vmem>>, %arg4: memref<2x16xf32, #tpu.memory_space<vmem>>, %arg5: memref<1x1x16xf32, #tpu.memory_space<vmem>>, %arg6: memref<1x16x128xf32, #tpu.memory_space<vmem>>, %arg7: memref<1x16x128xf32, #tpu.memory_space<vmem>>) attributes {dimension_semantics = [#tpu.dimension_semantics<parallel>, #tpu.dimension_semantics<arbitrary>], iteration_bounds = array<i64: 2, 1>, scalar_prefetch = 0 : i64, scratch_operands = 2 : i64, tpu.core_type = #tpu.core_type<tc>, window_params = [{transform_indices = @transform_0, window_bounds = array<i64: 1, 16, 256>}, {pipeline_mode = #tpu.pipeline_mode<synchronous>, transform_indices = @transform_1, window_bounds = array<i64: 16, 2>}, {pipeline_mode = #tpu.pipeline_mode<synchronous>, transform_indices = @transform_2, window_bounds = array<i64: 2, 16>}, {transform_indices = @transform_3, window_bounds = array<i64: 1, 1, 16>}]} {
    %c0_i32 = arith.constant 0 : i32
    %0 = arith.cmpi eq, %arg1, %c0_i32 : i32
    %1 = arith.extui %0 : i1 to i32
    %c0_i32_0 = arith.constant 0 : i32
    %2 = arith.cmpi ne, %1, %c0_i32_0 : i32
    scf.if %2 {
      %cst = arith.constant 0.000000e+00 : f32
      %16 = vector.broadcast %cst : f32 to vector<1x16x128xf32>
      %c0_19 = arith.constant 0 : index
      %c0_20 = arith.constant 0 : index
      %c0_21 = arith.constant 0 : index
      %17 = vector.load %arg6[%c0_19, %c0_20, %c0_21] : memref<1x16x128xf32, #tpu.memory_space<vmem>>, vector<1x16x128xf32>
      tpu.vector_store %arg6[%c0_19, %c0_20, %c0_21], %16 {strides = array<i32>} : memref<1x16x128xf32, #tpu.memory_space<vmem>>, vector<1x16x128xf32>,
      %cst_22 = arith.constant 0xFF800000 : f32
      %18 = vector.broadcast %cst_22 : f32 to vector<1x16x128xf32>
      %c0_23 = arith.constant 0 : index
      %c0_24 = arith.constant 0 : index
      %c0_25 = arith.constant 0 : index
      %19 = vector.load %arg7[%c0_23, %c0_24, %c0_25] : memref<1x16x128xf32, #tpu.memory_space<vmem>>, vector<1x16x128xf32>
      tpu.vector_store %arg7[%c0_23, %c0_24, %c0_25], %18 {strides = array<i32>} : memref<1x16x128xf32, #tpu.memory_space<vmem>>, vector<1x16x128xf32>,
    } else {
    }
    %c0 = arith.constant 0 : index
    %c0_1 = arith.constant 0 : index
    %c0_2 = arith.constant 0 : index
    %3 = vector.load %arg2[%c0, %c0_1, %c0_2] : memref<1x16x256xf32, #tpu.memory_space<vmem>>, vector<1x16x128xf32>
    %c0_3 = arith.constant 0 : index
    %c0_4 = arith.constant 0 : index
    %c128 = arith.constant 128 : index
    %4 = vector.load %arg2[%c0_3, %c0_4, %c128] : memref<1x16x256xf32, #tpu.memory_space<vmem>>, vector<1x16x128xf32>
    %5 = arith.addf %3, %4 : vector<1x16x128xf32>
    %6 = arith.maximumf %3, %4 : vector<1x16x128xf32>
    %c0_5 = arith.constant 0 : index
    %c0_6 = arith.constant 0 : index
    %c0_7 = arith.constant 0 : index
    %7 = vector.load %arg6[%c0_5, %c0_6, %c0_7] : memref<1x16x128xf32, #tpu.memory_space<vmem>>, vector<1x16x128xf32>
    %8 = arith.addf %7, %5 : vector<1x16x128xf32>
    %c0_8 = arith.constant 0 : index
    %c0_9 = arith.constant 0 : index
    %c0_10 = arith.constant 0 : index
    %9 = vector.load %arg6[%c0_8, %c0_9, %c0_10] : memref<1x16x128xf32, #tpu.memory_space<vmem>>, vector<1x16x128xf32>
    tpu.vector_store %arg6[%c0_8, %c0_9, %c0_10], %8 {strides = array<i32>} : memref<1x16x128xf32, #tpu.memory_space<vmem>>, vector<1x16x128xf32>,
    %c0_11 = arith.constant 0 : index
    %c0_12 = arith.constant 0 : index
    %c0_13 = arith.constant 0 : index
    %10 = vector.load %arg7[%c0_11, %c0_12, %c0_13] : memref<1x16x128xf32, #tpu.memory_space<vmem>>, vector<1x16x128xf32>
    %11 = arith.maximumf %10, %6 : vector<1x16x128xf32>
    %c0_14 = arith.constant 0 : index
    %c0_15 = arith.constant 0 : index
    %c0_16 = arith.constant 0 : index
    %12 = vector.load %arg7[%c0_14, %c0_15, %c0_16] : memref<1x16x128xf32, #tpu.memory_space<vmem>>, vector<1x16x128xf32>
    tpu.vector_store %arg7[%c0_14, %c0_15, %c0_16], %11 {strides = array<i32>} : memref<1x16x128xf32, #tpu.memory_space<vmem>>, vector<1x16x128xf32>,
    %c0_i32_17 = arith.constant 0 : i32
    %13 = arith.cmpi eq, %arg1, %c0_i32_17 : i32
    %14 = arith.extui %13 : i1 to i32
    %c0_i32_18 = arith.constant 0 : i32
    %15 = arith.cmpi ne, %14, %c0_i32_18 : i32
    scf.if %15 {
      %c0_19 = arith.constant 0 : index
      %c0_20 = arith.constant 0 : index
      %c0_21 = arith.constant 0 : index
      %16 = vector.load %arg6[%c0_19, %c0_20, %c0_21] : memref<1x16x128xf32, #tpu.memory_space<vmem>>, vector<1x16x128xf32>
      %cst = arith.constant dense<0.000000e+00> : vector<1x16xf32>
      %17 = vector.multi_reduction <add>, %16, %cst [2] : vector<1x16x128xf32> to vector<1x16xf32>
      %cst_22 = arith.constant 3.906250e-03 : f32
      %18 = vector.broadcast %cst_22 : f32 to vector<1x16xf32>
      %19 = arith.mulf %17, %18 : vector<1x16xf32>
      %c0_23 = arith.constant 0 : index
      %c0_24 = arith.constant 0 : index
      %c0_25 = arith.constant 0 : index
      %20 = vector.load %arg7[%c0_23, %c0_24, %c0_25] : memref<1x16x128xf32, #tpu.memory_space<vmem>>, vector<1x16x128xf32>
      %cst_26 = arith.constant dense<0xFF800000> : vector<1x16xf32>
      %21 = vector.multi_reduction <maximumf>, %20, %cst_26 [2] : vector<1x16x128xf32> to vector<1x16xf32>
      %22 = tpu.concatenate %19, %21 in 0 : vector<1x16xf32>, vector<1x16xf32> -> vector<2x16xf32>
      %c0_27 = arith.constant 0 : index
      %c0_28 = arith.constant 0 : index
      %23 = vector.load %arg3[%c0_27, %c0_28] : memref<16x2xf32, #tpu.memory_space<vmem>>, vector<16x2xf32>
      %cst_29 = arith.constant dense<0.000000e+00> : vector<2x2xf32>
      %24 = tpu.matmul %22, %23, %cst_29 {dimension_numbers = #tpu.dot_dimension_numbers<[1], [0], [0], [1], [0, 0, 1, 1], [], []>} : vector<2x16xf32>, vector<16x2xf32>, vector<2x2xf32> -> vector<2x2xf32>
      %cst_30 = arith.constant 0.000000e+00 : f32
      %25 = vector.broadcast %cst_30 : f32 to vector<2x2xf32>
      %26 = arith.maximumf %24, %25 : vector<2x2xf32>
      %c0_31 = arith.constant 0 : index
      %c0_32 = arith.constant 0 : index
      %27 = vector.load %arg4[%c0_31, %c0_32] : memref<2x16xf32, #tpu.memory_space<vmem>>, vector<2x16xf32>
      %cst_33 = arith.constant dense<0.000000e+00> : vector<2x16xf32>
      %28 = tpu.matmul %26, %27, %cst_33 {dimension_numbers = #tpu.dot_dimension_numbers<[1], [0], [0], [1], [0, 0, 1, 1], [], []>} : vector<2x2xf32>, vector<2x16xf32>, vector<2x16xf32> -> vector<2x16xf32>
      %29 = vector.extract_strided_slice %28 {offsets = [0, 0], sizes = [1, 16], strides = [1, 1]} : vector<2x16xf32> to vector<1x16xf32>
      %30 = vector.extract_strided_slice %28 {offsets = [1, 0], sizes = [1, 16], strides = [1, 1]} : vector<2x16xf32> to vector<1x16xf32>
      %31 = arith.addf %29, %30 : vector<1x16xf32>
      %32 = math.tanh %31 : vector<1x16xf32>
      %33 = vector.shape_cast %32 : vector<1x16xf32> to vector<1x1x16xf32>
      %c0_34 = arith.constant 0 : index
      %c0_35 = arith.constant 0 : index
      %c0_36 = arith.constant 0 : index
      %34 = vector.load %arg5[%c0_34, %c0_35, %c0_36] : memref<1x1x16xf32, #tpu.memory_space<vmem>>, vector<1x1x16xf32>
      tpu.vector_store %arg5[%c0_34, %c0_35, %c0_36], %33 {strides = array<i32>} : memref<1x1x16xf32, #tpu.memory_space<vmem>>, vector<1x1x16xf32>,
    } else {
    }
    return
  }
  func.func @transform_0(%arg0: i32, %arg1: i32) -> (i32, i32, i32) {
    %c0_i32 = arith.constant 0 : i32
    %c0_i32_0 = arith.constant 0 : i32
    return %arg0, %c0_i32, %arg1 : i32, i32, i32
  }
  func.func @transform_1(%arg0: i32, %arg1: i32) -> (i32, i32) {
    %c0_i32 = arith.constant 0 : i32
    %c0_i32_0 = arith.constant 0 : i32
    %c0_i32_1 = arith.constant 0 : i32
    return %c0_i32, %c0_i32_0 : i32, i32
  }
  func.func @transform_2(%arg0: i32, %arg1: i32) -> (i32, i32) {
    %c0_i32 = arith.constant 0 : i32
    %c0_i32_0 = arith.constant 0 : i32
    %c0_i32_1 = arith.constant 0 : i32
    return %c0_i32, %c0_i32_0 : i32, i32
  }
  func.func @transform_3(%arg0: i32, %arg1: i32) -> (i32, i32, i32) {
    %c0_i32 = arith.constant 0 : i32
    %c0_i32_0 = arith.constant 0 : i32
    %c0_i32_1 = arith.constant 0 : i32
    return %arg0, %c0_i32, %c0_i32_0 : i32, i32, i32
  }
}

</mosaic_0001>

<bundles_post_ra>
// kernel: tpu_custom_call.1
= control target key start
LH: loop header
LB: loop body
LE: loop exit
PB: predicated region body
PF: predicated region fallthrough
CT: control target
= control target key end

     0   :  { %8 = vsyncpa [#allocation5], 0  ;;  %s918_s0 = inlined_call_operand.hbm [shape: f32[2,16,256], index: 0, kind: input, shape index: {}]   ;;  %s919_s1 = inlined_call_operand.vmem [shape: f32[16,2], index: 1, kind: input, shape index: {}]   ;;  %s920_s2 = inlined_call_operand.vmem [shape: f32[2,16], index: 2, kind: input, shape index: {}]   ;;  %s921_s3 = inlined_call_operand.hbm [shape: f32[2,1,16], index: 3, kind: output, shape index: {}]  }
   0x1   :  { %10 = vsyncpa [#allocation5 + $0x1], 0 }
   0x2   :  { %11 = vsyncpa [#allocation6], 0 }
   0x3   :  { %13 = vsyncpa [#allocation6 + $0x1], 0  ;;  %s770_s12 = smov 0   ;;  %s772_s13 = smov 0  }
   0x4   :  { %s774_s14 = smov 0   ;;  %s776_s15 = smov 0  }
   0x5   :  { %s778_s16 = smov 0   ;;  %s780_s17 = smov 0  }
   0x6 LB: > { %s533_s18 = sadd.s32 4294967295, %s742_s17   ;;  %s534_s19 = sadd.s32 4294967294, %s742_s17   ;;  %s742_s17 = sphi %s780_s17, %s19_s17   ;;  %s738_s16 = sphi %s778_s16, %s932_s16   ;;  %s734_s15 = sphi %s776_s15, %s931_s15   ;;  %s730_s14 = sphi %s774_s14, %s930_s14   ;;  %s726_s13 = sphi %s772_s13, %s929_s13   ;;  %s722_s12 = sphi %s770_s12, %s928_s12  }
   0x7   : > { %s31_s20 = sadd.s32 1, %s738_s16  ;;  %s40_s21 = sadd.s32 1, %s730_s14 }
   0x8   : > { %p33_p0 = scmp.ge.s32.totalorder %s31_s20, 2  ;;  %p47_p1 = scmp.ne.s32.totalorder %s730_s14, %s726_s13 }
   0x9   : > { %p48_p2 = scmp.eq.s32.totalorder %s742_s17, 0  ;;  %p53_p3 = scmp.ne.s32.totalorder %s726_s13, %s722_s12 }
   0xa   : > { %s934_s20 = smov (%p33_p0, %s31_s20), 0  ;;  %p54_p5 = scmp.eq.s32.totalorder %s533_s18, 0 }
   0xb   : > { %p811_p4 = por %p48_p2, %p47_p1  ;;  %s35_s23 = ssub.s32 %s738_s16, %s934_s20 }
   0xc   : > { %p119_p6 = scmp.eq.s32.totalorder %s533_s18, 1  ;;  %p38_p7 = scmp.eq.s32.totalorder %s35_s23, 0 }
   0xd   : > { %p817_p8 = por %p54_p5, %p53_p3  ;;  %p125_p10 = scmp.eq.s32.totalorder %s534_s19, 1 }
   0xe   : > { %p821_p9 = por %p119_p6, %p47_p1  ;;  %p578_p13 = scmp.lt.s32.totalorder %s742_s17, 2 }
   0xf   : > { %s826_s26 = scalar_select %p38_p7, %s730_s14, %s40_s21  }
  0x10   : > { %p828_p11 = por %p125_p10, %p53_p3  ;;  %s151_s28 = sand.u32 1, %s730_s14  }
  0x11   : > { %s537_s29 = sshll.u32 %s151_s28, 5  ;;  %s548_s30 = sshll.u32 %s738_s16, 9 }
  0x12   : > { %s163_s6 = scalar_lea.hbm %s918_s0, %s548_s30  ;;  %s155_s7 = scalar_lea.vmem [#allocation4], %s537_s29 }
  0x13   : > { %s164_s8 = sshll.u32 %s155_s7, 4  ;;  %p841_p0 = pnand %p578_p13, %p811_p4  ;;  %s165_s8 = int_to_ptr.vmem [resolvable:$true] %s164_s8 }
  0x14   : > { %p540_p1 = scmp.ge.s32.totalorder %s742_s17, 1  ;;  %s152_s10 = scalar_lea.sflag [#allocation5], %s151_s28 }
  0x15   : > { %p636_p2 = pneg %p841_p0  ;;  %s647_s11 = scalar_lea.vmem %s165_s8, 512 }
  0x16   : > { %p648_p3 = scmp.ne.s32.totalorder %s165_s8, %s647_s11  ;;  %s744_s18 = smov [#allocation4]  }
  0x17   : > { %s652_s19 = sshll.u32 %s744_s18, 4  ;;  %s653_s19 = int_to_ptr.vmem [resolvable:$false] %s652_s19 }
  0x18   : > { %p650_p5 = pnand %p648_p3, %p636_p2  ;;  %s654_s21 = scalar_lea.vmem %s653_s19, 1024 }
  0x19   : > { %p655_p7 = scmp.lt.s32.totalorder %s165_s8, %s653_s19  ;;  %p656_p10 = scmp.lt.s32.totalorder %s654_s21, %s647_s11 }
  0x1a   : > { %p651_p6 = pneg %p650_p5 }
  0x1b   : > { %p657_p12 = por %p656_p10, %p655_p7 }
  0x1d   : > { %p658_p4 = pnand %p657_p12, %p651_p6 }
  0x1f   : > { %661 = shalt.err (!%p658_p4)
}
  0x20   : > { %s745_s22 = smov 256   ;;  %s746_s23 = smov 16  }
  0x21   : > { %573 = dma.hbm_to_vmem [thread:$0]  (!%p841_p0), %s163_s6, 512, %s165_s8, %s152_s10, %s745_s22, %s745_s22, %s746_s23  }
  0x22   : > { %p172_p13 = scmp.lt.s32.totalorder %s742_s17, 3 }
  0x24   : > { %p173_p2 = pnand %p540_p1, %p172_p13 }
  0x25   : > { %s854_s28 = sand.u32 (!%p173_p2), 1, %s726_s13  }
  0x26   : > { %176 = sbr.rel (%p173_p2) target bundleno = 614 (0x266), region = 32  ;;  %s541_s29 = sshll.u32 (!%p173_p2), %s854_s28, 5 }
  0x27   : > { %s179_s30 = scalar_lea.sflag (!%p173_p2), [#allocation5], %s854_s28  ;;  %s182_s4 = scalar_lea.vmem (!%p173_p2), [#allocation4], %s541_s29 }
  0x2b   : > { %713 = dma.done.wait (%p817_p8), %s179_s30, 512  }
  0x2c   : > { %715 = vsyncadd (%p817_p8), %s179_s30, 4294966784  ;;  %v213_v0 = vld [vmem:[%s182_s4] sm:$0xff]  ;;  %v215_v1 = vld [vmem:[%s182_s4 + $0x8] sm:$0xff]  ;;  %v747_v8 = vmov 0.0   ;;  %vm748_vm0 = vmmov 0   ;;  %v252_v11 = vlaneseq  ;;  %vm263_vm1 = vcmask 130112  }
  0x2d   : > { %v214_v2 = vld [vmem:[%s182_s4 + $0x10] sm:$0xff]  ;;  %v219_v3 = vmax.f32 %v213_v0, %v215_v1  ;;  %v217_v4 = vadd.f32 %v215_v1, %v213_v0  ;;  %v216_v5 = vld [vmem:[%s182_s4 + $0x18] sm:$0xff]  ;;  %554 = vmatprep.subr.mxu0 %v747_v8  ;;  %v281_v9 = vld [vmem:[%s919_s1 + $0x8] sm:$0xff]  ;;  %561 = vmatprep.subr.mxu1 %v747_v8  ;;  %vm278_vm2 = vcmask 1040384   ;;  %vm282_vm3 = vcmask 130048   ;;  %s545_s10 = sshll.u32 %s734_s15, 4 }
  0x2e   : > { %v220_v6 = vmax.f32 %v214_v2, %v216_v5  ;;  %v218_v7 = vadd.f32 %v216_v5, %v214_v2  ;;  %v280_v10 = vld [vmem:[%s919_s1] sm:$0xff]  ;;  %555 = vmatpush3.msra.mxu0 %v281_v9  ;;  %558 = vmatprep.mubr.msk.f32.mxu0 %vm748_vm0, %v747_v8  ;;  %v253_v12 = vand.u32 127, %v252_v11  ;;  %v255_v14 = vshrl.u32 %v252_v11, 7  ;;  %s203_s11 = scalar_lea.vmem [#allocation7], %s854_s28  ;;  %s876_s22 = scalar_lea.hbm %s921_s3, %s545_s10 }
  0x2f   : > { %246 = vmax.xlane.f32.xlu1 %v219_v3  ;;  %238 = vadd.xlane.f32.xlu0 %v217_v4  ;;  %v357_v30 = vld [vmem:[%s920_s2] sm:$0x3]  ;;  %vm362_vm4 = vcmask 1041408   ;;  %vm358_vm5 = vcmask 15360   ;;  %s456_s18 = sshll.u32 %s203_s11, 4  ;;  %vm441_vm6 = vcmask 122880   ;;  %s457_s18 = int_to_ptr.vmem [resolvable:$true] %s456_s18 }
  0x30   : > { %556 = vmatprep.subr.mxu0 %v747_v8  ;;  %563 = vmatprep.mubr.msk.f32.mxu1 %vm748_vm0, %v747_v8  ;;  %v258_v13 = vadd.s32 4294967288, %v253_v12  ;;  %v256_v18 = vsub.s32 %v253_v12, %v255_v14  ;;  %s444_s23 = scalar_lea.sflag [#allocation6], %s854_s28  ;;  %s662_s29 = scalar_lea.vmem %s457_s18, 16 }
  0x31   : > { %557 = vmatpush3.msra.mxu0 %v280_v10  ;;  %562 = vmatpush3.msk.msra.mxu1 %vm362_vm4, %v357_v30  ;;  %p663_p8 = scmp.ne.s32.totalorder %s457_s18, %s662_s29  ;;  %s749_s30 = smov [#allocation7]  }
  0x32   : > { %v261_v17 = vsub.s32 %v258_v13, %v255_v14  ;;  %s666_s4 = sshll.u32 %s749_s30, 4  ;;  %s667_s4 = int_to_ptr.vmem [resolvable:$false] %s666_s4 }
  0x33   : > { %248 = vmax.xlane.f32.xlu1 %v220_v6  ;;  %240 = vadd.xlane.f32.xlu0 %v218_v7  ;;  %p664_p12 = pnand %p663_p8, %p821_p9  ;;  %s668_s15 = scalar_lea.vmem %s667_s4, 32 }
  0x34   : > { %p669_p1 = scmp.lt.s32.totalorder %s457_s18, %s667_s4  ;;  %p670_p3 = scmp.lt.s32.totalorder %s668_s15, %s662_s29 }
  0x35   : > { %p665_p0 = pneg %p664_p12 }
  0x36   : > { %p671_p5 = por %p670_p3, %p669_p1 }
  0x38   : > { %p672_p6 = pnand %p671_p5, %p665_p0 }
  0xb8   : > { %v247_v15 = vpop.xlane.xlu1 %246  ;;  %v239_v16 = vpop.xlane.xlu0 %238 }
  0xb9   : > { %v242_v19 = vmul.f32 0.00390625, %v239_v16  ;;  %v271_v24 = vrot.slane %v247_v15, %v256_v18 }
  0xbb   : > { %v257_v25 = vrot.slane %v242_v19, %v256_v18 }
  0xbc   : > { %v249_v20 = vpop.xlane.xlu1 %248  ;;  %v241_v21 = vpop.xlane.xlu0 %240 }
  0xbd   : > { %v275_v22 = vrot.slane %v249_v20, %v261_v17  ;;  %v243_v23 = vmul.f32 0.00390625, %v241_v21 }
  0xbf   : > { %v262_v26 = vrot.slane %v243_v23, %v261_v17  ;;  %v276_v27 = vsel %vm263_vm1, %v275_v22, %v271_v24 }
  0xc1   : > { %v264_v28 = vsel %vm263_vm1, %v262_v26, %v257_v25 }
  0xc2   : > { %v279_v29 = vsel %vm278_vm2, %v264_v28, %v276_v27 }
  0xc3   : > { %559 = vmatmul.mubr.msk.f32.vlgmr.msra.gmra.mxu0 %vm282_vm3, %v279_v29 }
 0x183   : > { %v352_v31 = vpop.f32.mrf.mxu0 }
 0x184   : > { %v356_v32 = vmax.f32 %v352_v31, 0.0 }
 0x185   : > { %v560_v33 = vpop.f32.mrf.mxu0 }
 0x186   : > { %564 = vmatmul.mubr.msk.f32.vlgmr.msra.gmra.mxu1 %vm358_vm5, %v356_v32 }
 0x246   : > { %v432_v34 = vpop.f32.mrf.mxu1 }
 0x247   : > { %v437_v35 = vrot.slane %v432_v34, 1 }
 0x248   : > { %v565_v36 = vpop.f32.mrf.mxu1 }
 0x249   : > { %v439_v37 = vadd.f32 %v437_v35, %v432_v34 }
 0x24b   : > { %632 = vtanh.f32 %v439_v37 }
 0x258   : > { %v633_v38 = vpop.eup %632 }
 0x259   : > { %442 = vst.msk [vmem:[%s203_s11] sm:$0x1] %vm441_vm6, %v633_v38 }
 0x25a   : > { %675 = shalt.err (!%p672_p6)
}
 0x25b   : > { %s676_s5 = scalar_lea.hbm %s876_s22, 16  ;;  %s680_s24 = scalar_lea.hbm %s921_s3, 32 }
 0x25c   : > { %p677_p7 = scmp.ne.s32.totalorder %s876_s22, %s676_s5  ;;  %p681_p13 = scmp.lt.s32.totalorder %s876_s22, %s921_s3 }
 0x25d   : > { %p682_p2 = scmp.lt.s32.totalorder %s680_s24, %s676_s5 }
 0x25e   : > { %p678_p10 = pnand %p677_p7, %p821_p9 }
 0x25f   : > { %p683_p8 = por %p682_p2, %p681_p13 }
 0x260   : > { %p679_p4 = pneg %p678_p10 }
 0x262   : > { %p684_p12 = pnand %p683_p8, %p679_p4 }
 0x264   : > { %687 = shalt.err (!%p684_p12)
}
 0x265   : > { %568 = dma.vmem_to_hbm [thread:$0]  (%p821_p9), %s457_s18, 16, %s876_s22, %s444_s23  }
 0x266 PF: > { %s468_s9 = sand.u32 1, %s722_s12   ;;  %p927_p0 = scmp.ge.s32.totalorder %s742_s17, 2 }
 0x267   : > { %s469_s10 = scalar_lea.sflag [#allocation6], %s468_s9 }
 0x268   : > { %p575_p1 = pnand %p927_p0, %p828_p11 }
 0x26a   : > { %p576_p3 = pneg %p575_p1 }
 0x26c   : > { %717 = dma.done.wait (%p576_p3), %s469_s10, 16  }
 0x26d   : > { %719 = vsyncadd (%p576_p3), %s469_s10, 4294967280  ;;  %s19_s17 = sadd.s32 1, %s742_s17   ;;  %s928_s12 = smov %s726_s13 }
 0x26e   : > { %p16_p5 = scmp.ge.s32.totalorder %s19_s17, 4   ;;  %s929_s13 = smov %s730_s14 }
 0x26f   : > { %s930_s14 = smov %s826_s26  ;;  %s931_s15 = smov %s738_s16 }
 0x270   : > { %s932_s16 = smov %s934_s20  ;;  %18 = sbr.rel (!%p16_p5) target bundleno = 6 (0x6), region = 85 }
 0x275   :  { %473 = vsyncpa [#allocation5], 1 }
 0x276   :  { %475 = vsyncpa [#allocation5 + $0x1], 1 }
 0x277   :  { %476 = vsyncpa [#allocation6], 1 }
 0x278   :  { %478 = vsyncpa [#allocation6 + $0x1], 1 }

</bundles_post_ra>
